<compile_context>
chip_gen: v6e
topology: v6e:2x2x1
jax: 0.10.0
libtpu: 0.0.40
codegen_flags: <defaults>
</compile_context>

<pallas_src>
import functools

import jax
import jax.numpy as jnp
from jax.experimental import pallas as pl
from jax.experimental.pallas import tpu as pltpu

EPS = 1e-5


# ----------------------------------------------------------------------------
# In-kernel helpers
# ----------------------------------------------------------------------------
def _linear_pair(x1, x2, w2):
    """MinLinear on one batch tile with a single fused MXU matmul.

    y_i = cat(x_i, min(x1,x2)) @ W2 where W2 is the full (2*Cin, Cout) weight.
    Both branches are stacked along sublanes so the whole tile is ONE
    (2*TB, 2*Cin) @ (2*Cin, Cout) dot.
    """
    tb = x1.shape[0]
    m = jnp.minimum(x1, x2)
    lhs = jnp.concatenate(
        [jnp.concatenate([x1, m], axis=1),
         jnp.concatenate([x2, m], axis=1)], axis=0)              # (2*TB, 2*Cin)
    ys = jnp.dot(lhs, w2, preferred_element_type=jnp.float32)    # f32 accumulate
    return ys[:tb], ys[tb:]


def _z_cat(x1, x2):
    """SquareMaxY features: cat((x1-x2)^2, max(x1,x2)) along channels, in f32."""
    x1f = x1.astype(jnp.float32)
    x2f = x2.astype(jnp.float32)
    d = x1f - x2f
    return jnp.concatenate([d * d, jnp.maximum(x1f, x2f)], axis=1)


# ----------------------------------------------------------------------------
# Pass 1: per-tile partial stats for WBatchNorm1d and SquareMaxY's BN
# ----------------------------------------------------------------------------
def _stats1_kernel(x1_ref, x2_ref, w_ref, wstat_ref, zstat_ref):
    x1 = x1_ref[...]
    x2 = x2_ref[...]
    y1, y2 = _linear_pair(x1, x2, w_ref[...])

    sum_w = jnp.sum(y1, axis=0, keepdims=True) + jnp.sum(y2, axis=0, keepdims=True)
    ssq_w = (jnp.sum(y1 * y1, axis=0, keepdims=True)
             + jnp.sum(y2 * y2, axis=0, keepdims=True))
    wstat_ref[...] = jnp.concatenate([sum_w, ssq_w], axis=0)      # (2, Cout)

    zc = _z_cat(x1, x2)                                           # (TB, 2*Cin)
    zstat_ref[...] = jnp.concatenate(
        [jnp.sum(zc, axis=0, keepdims=True),
         jnp.sum(zc * zc, axis=0, keepdims=True)], axis=0)        # (2, 2*Cin)


# ----------------------------------------------------------------------------
# Pass 2: per-tile partial stats for MaxY's BN (needs the global WBN affine)
# ----------------------------------------------------------------------------
def _stats2_kernel(x1_ref, x2_ref, w_ref, waff_ref, ystat_ref):
    x1 = x1_ref[...]
    x2 = x2_ref[...]
    y1, y2 = _linear_pair(x1, x2, w_ref[...])
    s_w = waff_ref[0:1, :]
    t_w = waff_ref[1:2, :]
    yb1 = jnp.maximum(y1 * s_w + t_w, 0.0)
    yb2 = jnp.maximum(y2 * s_w + t_w, 0.0)
    ymax = jnp.maximum(yb1, yb2)
    ystat_ref[...] = jnp.concatenate(
        [jnp.sum(ymax, axis=0, keepdims=True),
         jnp.sum(ymax * ymax, axis=0, keepdims=True)], axis=0)    # (2, Cout)


# ----------------------------------------------------------------------------
# Pass 3: recompute + apply all folded BN affines, write final concat directly
# ----------------------------------------------------------------------------
def _final_kernel(x1_ref, x2_ref, w_ref, yaff_ref, zaff_ref, out_ref):
    x1 = x1_ref[...]
    x2 = x2_ref[...]
    y1, y2 = _linear_pair(x1, x2, w_ref[...])
    s_w = yaff_ref[0:1, :]
    t_w = yaff_ref[1:2, :]
    s_y = yaff_ref[2:3, :]
    t_y = yaff_ref[3:4, :]
    yb1 = jnp.maximum(y1 * s_w + t_w, 0.0)
    yb2 = jnp.maximum(y2 * s_w + t_w, 0.0)
    y_out = jnp.maximum(yb1, yb2) * s_y + t_y                     # (TB, Cout)

    zc = _z_cat(x1, x2)                                           # (TB, 2*Cin)
    z_out = zc * zaff_ref[0:1, :] + zaff_ref[1:2, :]

    # One lane-dense, full-width store of the final concatenated row block.
    out_ref[...] = jnp.concatenate([y_out, z_out], axis=1).astype(out_ref.dtype)


# ----------------------------------------------------------------------------
# Host-side glue
# ----------------------------------------------------------------------------
def _bn_affine(tot, n, gamma, beta):
    """Training-mode BN folded to per-channel scale/shift (single-pass variance)."""
    mean = tot[0] / n
    var = jnp.maximum(tot[1] / n - mean * mean, 0.0)
    scale = gamma * jax.lax.rsqrt(var + EPS)
    shift = beta - mean * scale
    return scale, shift


def prepare_params(W, gamma_w, beta_w, gamma_y, beta_y, gamma_z, beta_z):
    """One-time parameter prep: single transposed MinLinear weight + f32 BN params."""
    return {
        "w2": jnp.asarray(W).T,                       # (2*Cin, Cout)
        "gamma_w": jnp.asarray(gamma_w, jnp.float32),
        "beta_w": jnp.asarray(beta_w, jnp.float32),
        "gamma_y": jnp.asarray(gamma_y, jnp.float32),
        "beta_y": jnp.asarray(beta_y, jnp.float32),
        "gamma_z": jnp.asarray(gamma_z, jnp.float32),
        "beta_z": jnp.asarray(beta_z, jnp.float32),
    }


def _vmem_limit_bytes():
    cap = None
    try:
        cap = getattr(pltpu.get_tpu_info(), "vmem_capacity_bytes", None)
    except Exception:
        cap = None
    if not cap:
        cap = 64 * 1024 * 1024          # conservative default (v7x physical VMEM)
    # ~3/4 of physical, capped: ~96 MiB on v5e/v6e (128 MiB), ~48 MiB on v7x (64 MiB).
    return int(min(cap * 3 // 4, 96 * 1024 * 1024))


def _auto_tb(B, cin, cout, in_bytes, out_bytes, vmem_limit):
    """VMEM-budget-driven batch-tile size (largest mult-of-8 divisor of B <= target)."""
    per_row = (4 * cin * in_bytes                   # x1, x2 blocks, double-buffered
               + 2 * (cout + 2 * cin) * out_bytes   # final out block, double-buffered
               + 4 * (10 * cin + 8 * cout))         # rough in-kernel f32 temporaries
    fixed = 8 * (2 * cin * cout) * 4 + (2 << 20)    # weight buffers + affine/stat slack
    target = max(8, (vmem_limit // 2 - fixed) // per_row)
    if B >= 1024:
        target = min(target, B // 2)                # keep >=2 tiles for v7x megacore
    best = None
    d = 1
    while d * d <= B:
        if B % d == 0:
            for c in (d, B // d):
                if c <= target and c % 8 == 0 and (best is None or c > best):
                    best = c
        d += 1
    # Fallback: whole batch as one block (block == full dim is always layout-legal).
    return best if best is not None else B


@functools.partial(jax.jit, static_argnames=("tb", "out_dtype"))
def aa2_block(x1, x2, params, *, tb=None, out_dtype=None):
    """AA2Block forward.  x1, x2: (B, Cin); params from prepare_params."""
    B, cin = x1.shape
    w2 = params["w2"]
    cout = w2.shape[1]
    c_all = cout + 2 * cin
    out_dtype = jnp.dtype(out_dtype) if out_dtype is not None else x1.dtype
    in_b = jnp.dtype(x1.dtype).itemsize
    out_b = jnp.dtype(out_dtype).itemsize

    vlimit = _vmem_limit_bytes()
    if tb is None:
        tb = _auto_tb(B, cin, cout, in_b, out_b, vlimit)
    assert B % tb == 0 and (tb % 8 == 0 or tb == B), (B, tb)
    nt = B // tb

    cparams = pltpu.CompilerParams(
        dimension_semantics=("parallel",),           # batch tiles -> both TCs on v7x
        vmem_limit_bytes=vlimit,
    )

    x_spec = pl.BlockSpec((tb, cin), lambda i: (i, 0))
    w_spec = pl.BlockSpec((2 * cin, cout), lambda i: (0, 0))
    stat_spec = lambda c: pl.BlockSpec((None, 2, c), lambda i: (i, 0, 0))

    mm_flops = 8 * B * cin * cout                     # one fused dot per pass
    x_bytes = 2 * B * cin * in_b
    w_bytes = int(w2.size) * jnp.dtype(w2.dtype).itemsize

    # ---- pass 1: WBatchNorm1d + SquareMaxY partial sums ----
    wstat, zstat = pl.pallas_call(
        _stats1_kernel,
        out_shape=(jax.ShapeDtypeStruct((nt, 2, cout), jnp.float32),
                   jax.ShapeDtypeStruct((nt, 2, 2 * cin), jnp.float32)),
        grid=(nt,),
        in_specs=[x_spec, x_spec, w_spec],
        out_specs=(stat_spec(cout), stat_spec(2 * cin)),
        compiler_params=cparams,
        cost_estimate=pl.CostEstimate(
            flops=mm_flops, transcendentals=0,
            bytes_accessed=x_bytes + w_bytes + nt * 2 * (cout + 2 * cin) * 4),
    )(x1, x2, w2)

    # Tiny XLA glue: reduce partials -> global folded affines.
    s_w, t_w = _bn_affine(wstat.sum(0), 2.0 * B, params["gamma_w"], params["beta_w"])
    s_z, t_z = _bn_affine(zstat.sum(0), float(B), params["gamma_z"], params["beta_z"])
    waff = jnp.stack([s_w, t_w], axis=0)              # (2, Cout) - one DMA

    # ---- pass 2: MaxY BN partial sums ----
    ystat = pl.pallas_call(
        _stats2_kernel,
        out_shape=jax.ShapeDtypeStruct((nt, 2, cout), jnp.float32),
        grid=(nt,),
        in_specs=[x_spec, x_spec, w_spec, pl.BlockSpec((2, cout), lambda i: (0, 0))],
        out_specs=stat_spec(cout),
        compiler_params=cparams,
        cost_estimate=pl.CostEstimate(
            flops=mm_flops, transcendentals=0,
            bytes_accessed=x_bytes + w_bytes + 2 * cout * 4 + nt * 2 * cout * 4),
    )(x1, x2, w2, waff)

    s_y, t_y = _bn_affine(ystat.sum(0), float(B), params["gamma_y"], params["beta_y"])
    yaff = jnp.stack([s_w, t_w, s_y, t_y], axis=0)    # (4, Cout) - one DMA
    zaff = jnp.stack([s_z, t_z], axis=0)              # (2, 2*Cin) - one DMA

    # ---- pass 3: recompute + apply all BN affines, write final concat directly ----
    out = pl.pallas_call(
        _final_kernel,
        out_shape=jax.ShapeDtypeStruct((B, c_all), out_dtype),
        grid=(nt,),
        in_specs=[x_spec, x_spec, w_spec,
                  pl.BlockSpec((4, cout), lambda i: (0, 0)),
                  pl.BlockSpec((2, 2 * cin), lambda i: (0, 0))],
        out_specs=pl.BlockSpec((tb, c_all), lambda i: (i, 0)),
        compiler_params=cparams,
        cost_estimate=pl.CostEstimate(
            flops=mm_flops, transcendentals=0,
            bytes_accessed=x_bytes + w_bytes + (4 * cout + 4 * cin) * 4
                           + B * c_all * out_b),
    )(x1, x2, w2, yaff, zaff)
    return out


# ----------------------------------------------------------------------------
# Pure-JAX reference
# ----------------------------------------------------------------------------
def aa2_block_ref(x1, x2, W, gamma_w, beta_w, gamma_y, beta_y, gamma_z, beta_z):
    cin = x1.shape[1]
    m = jnp.minimum(x1, x2)
    w_self, w_min = W[:, :cin], W[:, cin:]
    y1 = x1 @ w_self.T + m @ w_min.T
    y2 = x2 @ w_self.T + m @ w_min.T

    def bn(v, mean, var, g, b):
        return (v - mean) * jax.lax.rsqrt(var + EPS) * g + b

    ycat = jnp.concatenate([y1, y2], axis=0)
    mu_w = ycat.mean(0)
    var_w = ((ycat - mu_w) ** 2).mean(0)
    yb1 = jax.nn.relu(bn(y1, mu_w, var_w, gamma_w, beta_w))
    yb2 = jax.nn.relu(bn(y2, mu_w, var_w, gamma_w, beta_w))
    ymax = jnp.maximum(yb1, yb2)
    mu_y = ymax.mean(0)
    var_y = ((ymax - mu_y) ** 2).mean(0)
    y = bn(ymax, mu_y, var_y, gamma_y, beta_y)

    z = jnp.concatenate([(x1 - x2) ** 2, jnp.maximum(x1, x2)], axis=1)
    mu_z = z.mean(0)
    var_z = ((z - mu_z) ** 2).mean(0)
    z = bn(z, mu_z, var_z, gamma_z, beta_z)
    return jnp.concatenate([y, z], axis=1)


if __name__ == "__main__":
    B, C_IN, C_OUT, TB = 16, 32, 64, 8   # TB < B -> exercises cross-tile BN stats

    key = jax.random.PRNGKey(0)
    ks = jax.random.split(key, 9)
    x1 = jax.random.normal(ks[0], (B, C_IN), dtype=jnp.float32)
    x2 = jax.random.normal(ks[1], (B, C_IN), dtype=jnp.float32)
    # MinLinear weight: nn.Linear(2*C_IN, C_OUT, bias=False) -> (C_OUT, 2*C_IN)
    W = 0.1 * jax.random.normal(ks[2], (C_OUT, 2 * C_IN), dtype=jnp.float32)
    gamma_w = 1.0 + 0.1 * jax.random.normal(ks[3], (C_OUT,), dtype=jnp.float32)
    beta_w = 0.1 * jax.random.normal(ks[4], (C_OUT,), dtype=jnp.float32)
    gamma_y = 1.0 + 0.1 * jax.random.normal(ks[5], (C_OUT,), dtype=jnp.float32)
    beta_y = 0.1 * jax.random.normal(ks[6], (C_OUT,), dtype=jnp.float32)
    gamma_z = 1.0 + 0.1 * jax.random.normal(ks[7], (2 * C_IN,), dtype=jnp.float32)
    beta_z = 0.1 * jax.random.normal(ks[8], (2 * C_IN,), dtype=jnp.float32)

    params = prepare_params(W, gamma_w, beta_w, gamma_y, beta_y, gamma_z, beta_z)

    # Explicit small tile (multi-tile path) and auto-sized tile (default path).
    out = jax.block_until_ready(aa2_block(x1, x2, params, tb=TB))
    out_auto = jax.block_until_ready(aa2_block(x1, x2, params))

    ref = aa2_block_ref(x1, x2, W, gamma_w, beta_w, gamma_y, beta_y,
                        gamma_z, beta_z)
    assert out.shape == (B, C_OUT + 2 * C_IN), out.shape
    err = float(jnp.max(jnp.abs(out - ref)))
    err_auto = float(jnp.max(jnp.abs(out_auto - ref)))
    assert jnp.allclose(out, ref, atol=5e-4, rtol=5e-4), err
    assert jnp.allclose(out_auto, ref, atol=5e-4, rtol=5e-4), err_auto
    print("KERNEL_OK")
</pallas_src>

<mosaic_0001>
module attributes {stable_mosaic.version = 11 : i64} {
  func.func @_stats1_kernel(%arg0: i32, %arg1: memref<8x32xf32, #tpu.memory_space<vmem>>, %arg2: memref<8x32xf32, #tpu.memory_space<vmem>>, %arg3: memref<64x64xf32, #tpu.memory_space<vmem>>, %arg4: memref<1x2x64xf32, #tpu.memory_space<vmem>>, %arg5: memref<1x2x64xf32, #tpu.memory_space<vmem>>) attributes {dimension_semantics = [#tpu.dimension_semantics<parallel>], iteration_bounds = array<i64: 2>, scalar_prefetch = 0 : i64, scratch_operands = 0 : i64, tpu.core_type = #tpu.core_type<tc>, window_params = [{transform_indices = @transform_0, window_bounds = array<i64: 8, 32>}, {transform_indices = @transform_1, window_bounds = array<i64: 8, 32>}, {pipeline_mode = #tpu.pipeline_mode<synchronous>, transform_indices = @transform_2, window_bounds = array<i64: 64, 64>}, {transform_indices = @transform_3, window_bounds = array<i64: 1, 2, 64>}, {transform_indices = @transform_4, window_bounds = array<i64: 1, 2, 64>}]} {
    %c0 = arith.constant 0 : index
    %c0_0 = arith.constant 0 : index
    %0 = vector.load %arg1[%c0, %c0_0] : memref<8x32xf32, #tpu.memory_space<vmem>>, vector<8x32xf32>
    %c0_1 = arith.constant 0 : index
    %c0_2 = arith.constant 0 : index
    %1 = vector.load %arg2[%c0_1, %c0_2] : memref<8x32xf32, #tpu.memory_space<vmem>>, vector<8x32xf32>
    %c0_3 = arith.constant 0 : index
    %c0_4 = arith.constant 0 : index
    %2 = vector.load %arg3[%c0_3, %c0_4] : memref<64x64xf32, #tpu.memory_space<vmem>>, vector<64x64xf32>
    %3 = arith.minimumf %0, %1 : vector<8x32xf32>
    %4 = tpu.concatenate %0, %3 in 1 : vector<8x32xf32>, vector<8x32xf32> -> vector<8x64xf32>
    %5 = tpu.concatenate %1, %3 in 1 : vector<8x32xf32>, vector<8x32xf32> -> vector<8x64xf32>
    %6 = tpu.concatenate %4, %5 in 0 : vector<8x64xf32>, vector<8x64xf32> -> vector<16x64xf32>
    %cst = arith.constant dense<0.000000e+00> : vector<16x64xf32>
    %7 = tpu.matmul %6, %2, %cst {dimension_numbers = #tpu.dot_dimension_numbers<[1], [0], [0], [1], [0, 0, 1, 1], [], []>} : vector<16x64xf32>, vector<64x64xf32>, vector<16x64xf32> -> vector<16x64xf32>
    %8 = vector.extract_strided_slice %7 {offsets = [0, 0], sizes = [8, 64], strides = [1, 1]} : vector<16x64xf32> to vector<8x64xf32>
    %9 = vector.extract_strided_slice %7 {offsets = [8, 0], sizes = [8, 64], strides = [1, 1]} : vector<16x64xf32> to vector<8x64xf32>
    %cst_5 = arith.constant dense<0.000000e+00> : vector<64xf32>
    %10 = vector.multi_reduction <add>, %8, %cst_5 [0] : vector<8x64xf32> to vector<64xf32>
    %11 = vector.shape_cast %10 : vector<64xf32> to vector<1x64xf32>
    %cst_6 = arith.constant dense<0.000000e+00> : vector<64xf32>
    %12 = vector.multi_reduction <add>, %9, %cst_6 [0] : vector<8x64xf32> to vector<64xf32>
    %13 = vector.shape_cast %12 : vector<64xf32> to vector<1x64xf32>
    %14 = arith.addf %11, %13 : vector<1x64xf32>
    %15 = arith.mulf %8, %8 : vector<8x64xf32>
    %cst_7 = arith.constant dense<0.000000e+00> : vector<64xf32>
    %16 = vector.multi_reduction <add>, %15, %cst_7 [0] : vector<8x64xf32> to vector<64xf32>
    %17 = vector.shape_cast %16 : vector<64xf32> to vector<1x64xf32>
    %18 = arith.mulf %9, %9 : vector<8x64xf32>
    %cst_8 = arith.constant dense<0.000000e+00> : vector<64xf32>
    %19 = vector.multi_reduction <add>, %18, %cst_8 [0] : vector<8x64xf32> to vector<64xf32>
    %20 = vector.shape_cast %19 : vector<64xf32> to vector<1x64xf32>
    %21 = arith.addf %17, %20 : vector<1x64xf32>
    %22 = tpu.concatenate %14, %21 in 0 : vector<1x64xf32>, vector<1x64xf32> -> vector<2x64xf32>
    %c0_9 = arith.constant 0 : index
    %c0_10 = arith.constant 0 : index
    %c0_11 = arith.constant 0 : index
    %23 = vector.load %arg4[%c0_9, %c0_10, %c0_11] : memref<1x2x64xf32, #tpu.memory_space<vmem>>, vector<1x2x64xf32>
    %24 = vector.shape_cast %23 : vector<1x2x64xf32> to vector<2x64xf32>
    %25 = vector.shape_cast %22 : vector<2x64xf32> to vector<1x2x64xf32>
    tpu.vector_store %arg4[%c0_9, %c0_10, %c0_11], %25 {strides = array<i32>} : memref<1x2x64xf32, #tpu.memory_space<vmem>>, vector<1x2x64xf32>,
    %26 = arith.subf %0, %1 : vector<8x32xf32>
    %27 = arith.mulf %26, %26 : vector<8x32xf32>
    %28 = arith.maximumf %0, %1 : vector<8x32xf32>
    %29 = tpu.concatenate %27, %28 in 1 : vector<8x32xf32>, vector<8x32xf32> -> vector<8x64xf32>
    %cst_12 = arith.constant dense<0.000000e+00> : vector<64xf32>
    %30 = vector.multi_reduction <add>, %29, %cst_12 [0] : vector<8x64xf32> to vector<64xf32>
    %31 = vector.shape_cast %30 : vector<64xf32> to vector<1x64xf32>
    %32 = arith.mulf %29, %29 : vector<8x64xf32>
    %cst_13 = arith.constant dense<0.000000e+00> : vector<64xf32>
    %33 = vector.multi_reduction <add>, %32, %cst_13 [0] : vector<8x64xf32> to vector<64xf32>
    %34 = vector.shape_cast %33 : vector<64xf32> to vector<1x64xf32>
    %35 = tpu.concatenate %31, %34 in 0 : vector<1x64xf32>, vector<1x64xf32> -> vector<2x64xf32>
    %c0_14 = arith.constant 0 : index
    %c0_15 = arith.constant 0 : index
    %c0_16 = arith.constant 0 : index
    %36 = vector.load %arg5[%c0_14, %c0_15, %c0_16] : memref<1x2x64xf32, #tpu.memory_space<vmem>>, vector<1x2x64xf32>
    %37 = vector.shape_cast %36 : vector<1x2x64xf32> to vector<2x64xf32>
    %38 = vector.shape_cast %35 : vector<2x64xf32> to vector<1x2x64xf32>
    tpu.vector_store %arg5[%c0_14, %c0_15, %c0_16], %38 {strides = array<i32>} : memref<1x2x64xf32, #tpu.memory_space<vmem>>, vector<1x2x64xf32>,
    return
  }
  func.func @transform_0(%arg0: i32) -> (i32, i32) {
    %c0_i32 = arith.constant 0 : i32
    %c0_i32_0 = arith.constant 0 : i32
    return %arg0, %c0_i32 : i32, i32
  }
  func.func @transform_1(%arg0: i32) -> (i32, i32) {
    %c0_i32 = arith.constant 0 : i32
    %c0_i32_0 = arith.constant 0 : i32
    return %arg0, %c0_i32 : i32, i32
  }
  func.func @transform_2(%arg0: i32) -> (i32, i32) {
    %c0_i32 = arith.constant 0 : i32
    %c0_i32_0 = arith.constant 0 : i32
    %c0_i32_1 = arith.constant 0 : i32
    return %c0_i32, %c0_i32_0 : i32, i32
  }
  func.func @transform_3(%arg0: i32) -> (i32, i32, i32) {
    %c0_i32 = arith.constant 0 : i32
    %c0_i32_0 = arith.constant 0 : i32
    %c0_i32_1 = arith.constant 0 : i32
    return %arg0, %c0_i32, %c0_i32_0 : i32, i32, i32
  }
  func.func @transform_4(%arg0: i32) -> (i32, i32, i32) {
    %c0_i32 = arith.constant 0 : i32
    %c0_i32_0 = arith.constant 0 : i32
    %c0_i32_1 = arith.constant 0 : i32
    return %arg0, %c0_i32, %c0_i32_0 : i32, i32, i32
  }
}

module attributes {stable_mosaic.version = 11 : i64} {
  func.func @_stats2_kernel(%arg0: i32, %arg1: memref<8x32xf32, #tpu.memory_space<vmem>>, %arg2: memref<8x32xf32, #tpu.memory_space<vmem>>, %arg3: memref<64x64xf32, #tpu.memory_space<vmem>>, %arg4: memref<2x64xf32, #tpu.memory_space<vmem>>, %arg5: memref<1x2x64xf32, #tpu.memory_space<vmem>>) attributes {dimension_semantics = [#tpu.dimension_semantics<parallel>], iteration_bounds = array<i64: 2>, scalar_prefetch = 0 : i64, scratch_operands = 0 : i64, tpu.core_type = #tpu.core_type<tc>, window_params = [{transform_indices = @transform_0, window_bounds = array<i64: 8, 32>}, {transform_indices = @transform_1, window_bounds = array<i64: 8, 32>}, {pipeline_mode = #tpu.pipeline_mode<synchronous>, transform_indices = @transform_2, window_bounds = array<i64: 64, 64>}, {pipeline_mode = #tpu.pipeline_mode<synchronous>, transform_indices = @transform_3, window_bounds = array<i64: 2, 64>}, {transform_indices = @transform_4, window_bounds = array<i64: 1, 2, 64>}]} {
    %c0 = arith.constant 0 : index
    %c0_0 = arith.constant 0 : index
    %0 = vector.load %arg1[%c0, %c0_0] : memref<8x32xf32, #tpu.memory_space<vmem>>, vector<8x32xf32>
    %c0_1 = arith.constant 0 : index
    %c0_2 = arith.constant 0 : index
    %1 = vector.load %arg2[%c0_1, %c0_2] : memref<8x32xf32, #tpu.memory_space<vmem>>, vector<8x32xf32>
    %c0_3 = arith.constant 0 : index
    %c0_4 = arith.constant 0 : index
    %2 = vector.load %arg3[%c0_3, %c0_4] : memref<64x64xf32, #tpu.memory_space<vmem>>, vector<64x64xf32>
    %3 = arith.minimumf %0, %1 : vector<8x32xf32>
    %4 = tpu.concatenate %0, %3 in 1 : vector<8x32xf32>, vector<8x32xf32> -> vector<8x64xf32>
    %5 = tpu.concatenate %1, %3 in 1 : vector<8x32xf32>, vector<8x32xf32> -> vector<8x64xf32>
    %6 = tpu.concatenate %4, %5 in 0 : vector<8x64xf32>, vector<8x64xf32> -> vector<16x64xf32>
    %cst = arith.constant dense<0.000000e+00> : vector<16x64xf32>
    %7 = tpu.matmul %6, %2, %cst {dimension_numbers = #tpu.dot_dimension_numbers<[1], [0], [0], [1], [0, 0, 1, 1], [], []>} : vector<16x64xf32>, vector<64x64xf32>, vector<16x64xf32> -> vector<16x64xf32>
    %8 = vector.extract_strided_slice %7 {offsets = [0, 0], sizes = [8, 64], strides = [1, 1]} : vector<16x64xf32> to vector<8x64xf32>
    %9 = vector.extract_strided_slice %7 {offsets = [8, 0], sizes = [8, 64], strides = [1, 1]} : vector<16x64xf32> to vector<8x64xf32>
    %c0_5 = arith.constant 0 : index
    %c0_6 = arith.constant 0 : index
    %10 = vector.load %arg4[%c0_5, %c0_6] : memref<2x64xf32, #tpu.memory_space<vmem>>, vector<1x64xf32>
    %c1 = arith.constant 1 : index
    %c0_7 = arith.constant 0 : index
    %11 = vector.load %arg4[%c1, %c0_7] : memref<2x64xf32, #tpu.memory_space<vmem>>, vector<1x64xf32>
    %12 = vector.broadcast %10 : vector<1x64xf32> to vector<8x64xf32>
    %13 = arith.mulf %8, %12 : vector<8x64xf32>
    %14 = vector.broadcast %11 : vector<1x64xf32> to vector<8x64xf32>
    %15 = arith.addf %13, %14 : vector<8x64xf32>
    %cst_8 = arith.constant 0.000000e+00 : f32
    %16 = vector.broadcast %cst_8 : f32 to vector<8x64xf32>
    %17 = arith.maximumf %15, %16 : vector<8x64xf32>
    %18 = vector.broadcast %10 : vector<1x64xf32> to vector<8x64xf32>
    %19 = arith.mulf %9, %18 : vector<8x64xf32>
    %20 = vector.broadcast %11 : vector<1x64xf32> to vector<8x64xf32>
    %21 = arith.addf %19, %20 : vector<8x64xf32>
    %cst_9 = arith.constant 0.000000e+00 : f32
    %22 = vector.broadcast %cst_9 : f32 to vector<8x64xf32>
    %23 = arith.maximumf %21, %22 : vector<8x64xf32>
    %24 = arith.maximumf %17, %23 : vector<8x64xf32>
    %cst_10 = arith.constant dense<0.000000e+00> : vector<64xf32>
    %25 = vector.multi_reduction <add>, %24, %cst_10 [0] : vector<8x64xf32> to vector<64xf32>
    %26 = vector.shape_cast %25 : vector<64xf32> to vector<1x64xf32>
    %27 = arith.mulf %24, %24 : vector<8x64xf32>
    %cst_11 = arith.constant dense<0.000000e+00> : vector<64xf32>
    %28 = vector.multi_reduction <add>, %27, %cst_11 [0] : vector<8x64xf32> to vector<64xf32>
    %29 = vector.shape_cast %28 : vector<64xf32> to vector<1x64xf32>
    %30 = tpu.concatenate %26, %29 in 0 : vector<1x64xf32>, vector<1x64xf32> -> vector<2x64xf32>
    %c0_12 = arith.constant 0 : index
    %c0_13 = arith.constant 0 : index
    %c0_14 = arith.constant 0 : index
    %31 = vector.load %arg5[%c0_12, %c0_13, %c0_14] : memref<1x2x64xf32, #tpu.memory_space<vmem>>, vector<1x2x64xf32>
    %32 = vector.shape_cast %31 : vector<1x2x64xf32> to vector<2x64xf32>
    %33 = vector.shape_cast %30 : vector<2x64xf32> to vector<1x2x64xf32>
    tpu.vector_store %arg5[%c0_12, %c0_13, %c0_14], %33 {strides = array<i32>} : memref<1x2x64xf32, #tpu.memory_space<vmem>>, vector<1x2x64xf32>,
    return
  }
  func.func @transform_0(%arg0: i32) -> (i32, i32) {
    %c0_i32 = arith.constant 0 : i32
    %c0_i32_0 = arith.constant 0 : i32
    return %arg0, %c0_i32 : i32, i32
  }
  func.func @transform_1(%arg0: i32) -> (i32, i32) {
    %c0_i32 = arith.constant 0 : i32
    %c0_i32_0 = arith.constant 0 : i32
    return %arg0, %c0_i32 : i32, i32
  }
  func.func @transform_2(%arg0: i32) -> (i32, i32) {
    %c0_i32 = arith.constant 0 : i32
    %c0_i32_0 = arith.constant 0 : i32
    %c0_i32_1 = arith.constant 0 : i32
    return %c0_i32, %c0_i32_0 : i32, i32
  }
  func.func @transform_3(%arg0: i32) -> (i32, i32) {
    %c0_i32 = arith.constant 0 : i32
    %c0_i32_0 = arith.constant 0 : i32
    %c0_i32_1 = arith.constant 0 : i32
    return %c0_i32, %c0_i32_0 : i32, i32
  }
  func.func @transform_4(%arg0: i32) -> (i32, i32, i32) {
    %c0_i32 = arith.constant 0 : i32
    %c0_i32_0 = arith.constant 0 : i32
    %c0_i32_1 = arith.constant 0 : i32
    return %arg0, %c0_i32, %c0_i32_0 : i32, i32, i32
  }
}

module attributes {stable_mosaic.version = 11 : i64} {
  func.func @_final_kernel(%arg0: i32, %arg1: memref<8x32xf32, #tpu.memory_space<vmem>>, %arg2: memref<8x32xf32, #tpu.memory_space<vmem>>, %arg3: memref<64x64xf32, #tpu.memory_space<vmem>>, %arg4: memref<4x64xf32, #tpu.memory_space<vmem>>, %arg5: memref<2x64xf32, #tpu.memory_space<vmem>>, %arg6: memref<8x128xf32, #tpu.memory_space<vmem>>) attributes {dimension_semantics = [#tpu.dimension_semantics<parallel>], iteration_bounds = array<i64: 2>, scalar_prefetch = 0 : i64, scratch_operands = 0 : i64, tpu.core_type = #tpu.core_type<tc>, window_params = [{transform_indices = @transform_0, window_bounds = array<i64: 8, 32>}, {transform_indices = @transform_1, window_bounds = array<i64: 8, 32>}, {pipeline_mode = #tpu.pipeline_mode<synchronous>, transform_indices = @transform_2, window_bounds = array<i64: 64, 64>}, {pipeline_mode = #tpu.pipeline_mode<synchronous>, transform_indices = @transform_3, window_bounds = array<i64: 4, 64>}, {pipeline_mode = #tpu.pipeline_mode<synchronous>, transform_indices = @transform_4, window_bounds = array<i64: 2, 64>}, {transform_indices = @transform_5, window_bounds = array<i64: 8, 128>}]} {
    %c0 = arith.constant 0 : index
    %c0_0 = arith.constant 0 : index
    %0 = vector.load %arg1[%c0, %c0_0] : memref<8x32xf32, #tpu.memory_space<vmem>>, vector<8x32xf32>
    %c0_1 = arith.constant 0 : index
    %c0_2 = arith.constant 0 : index
    %1 = vector.load %arg2[%c0_1, %c0_2] : memref<8x32xf32, #tpu.memory_space<vmem>>, vector<8x32xf32>
    %c0_3 = arith.constant 0 : index
    %c0_4 = arith.constant 0 : index
    %2 = vector.load %arg3[%c0_3, %c0_4] : memref<64x64xf32, #tpu.memory_space<vmem>>, vector<64x64xf32>
    %3 = arith.minimumf %0, %1 : vector<8x32xf32>
    %4 = tpu.concatenate %0, %3 in 1 : vector<8x32xf32>, vector<8x32xf32> -> vector<8x64xf32>
    %5 = tpu.concatenate %1, %3 in 1 : vector<8x32xf32>, vector<8x32xf32> -> vector<8x64xf32>
    %6 = tpu.concatenate %4, %5 in 0 : vector<8x64xf32>, vector<8x64xf32> -> vector<16x64xf32>
    %cst = arith.constant dense<0.000000e+00> : vector<16x64xf32>
    %7 = tpu.matmul %6, %2, %cst {dimension_numbers = #tpu.dot_dimension_numbers<[1], [0], [0], [1], [0, 0, 1, 1], [], []>} : vector<16x64xf32>, vector<64x64xf32>, vector<16x64xf32> -> vector<16x64xf32>
    %8 = vector.extract_strided_slice %7 {offsets = [0, 0], sizes = [8, 64], strides = [1, 1]} : vector<16x64xf32> to vector<8x64xf32>
    %9 = vector.extract_strided_slice %7 {offsets = [8, 0], sizes = [8, 64], strides = [1, 1]} : vector<16x64xf32> to vector<8x64xf32>
    %c0_5 = arith.constant 0 : index
    %c0_6 = arith.constant 0 : index
    %10 = vector.load %arg4[%c0_5, %c0_6] : memref<4x64xf32, #tpu.memory_space<vmem>>, vector<1x64xf32>
    %c1 = arith.constant 1 : index
    %c0_7 = arith.constant 0 : index
    %11 = vector.load %arg4[%c1, %c0_7] : memref<4x64xf32, #tpu.memory_space<vmem>>, vector<1x64xf32>
    %c2 = arith.constant 2 : index
    %c0_8 = arith.constant 0 : index
    %12 = vector.load %arg4[%c2, %c0_8] : memref<4x64xf32, #tpu.memory_space<vmem>>, vector<1x64xf32>
    %c3 = arith.constant 3 : index
    %c0_9 = arith.constant 0 : index
    %13 = vector.load %arg4[%c3, %c0_9] : memref<4x64xf32, #tpu.memory_space<vmem>>, vector<1x64xf32>
    %14 = vector.broadcast %10 : vector<1x64xf32> to vector<8x64xf32>
    %15 = arith.mulf %8, %14 : vector<8x64xf32>
    %16 = vector.broadcast %11 : vector<1x64xf32> to vector<8x64xf32>
    %17 = arith.addf %15, %16 : vector<8x64xf32>
    %cst_10 = arith.constant 0.000000e+00 : f32
    %18 = vector.broadcast %cst_10 : f32 to vector<8x64xf32>
    %19 = arith.maximumf %17, %18 : vector<8x64xf32>
    %20 = vector.broadcast %10 : vector<1x64xf32> to vector<8x64xf32>
    %21 = arith.mulf %9, %20 : vector<8x64xf32>
    %22 = vector.broadcast %11 : vector<1x64xf32> to vector<8x64xf32>
    %23 = arith.addf %21, %22 : vector<8x64xf32>
    %cst_11 = arith.constant 0.000000e+00 : f32
    %24 = vector.broadcast %cst_11 : f32 to vector<8x64xf32>
    %25 = arith.maximumf %23, %24 : vector<8x64xf32>
    %26 = arith.maximumf %19, %25 : vector<8x64xf32>
    %27 = vector.broadcast %12 : vector<1x64xf32> to vector<8x64xf32>
    %28 = arith.mulf %26, %27 : vector<8x64xf32>
    %29 = vector.broadcast %13 : vector<1x64xf32> to vector<8x64xf32>
    %30 = arith.addf %28, %29 : vector<8x64xf32>
    %31 = arith.subf %0, %1 : vector<8x32xf32>
    %32 = arith.mulf %31, %31 : vector<8x32xf32>
    %33 = arith.maximumf %0, %1 : vector<8x32xf32>
    %34 = tpu.concatenate %32, %33 in 1 : vector<8x32xf32>, vector<8x32xf32> -> vector<8x64xf32>
    %c0_12 = arith.constant 0 : index
    %c0_13 = arith.constant 0 : index
    %35 = vector.load %arg5[%c0_12, %c0_13] : memref<2x64xf32, #tpu.memory_space<vmem>>, vector<1x64xf32>
    %36 = vector.broadcast %35 : vector<1x64xf32> to vector<8x64xf32>
    %37 = arith.mulf %34, %36 : vector<8x64xf32>
    %c1_14 = arith.constant 1 : index
    %c0_15 = arith.constant 0 : index
    %38 = vector.load %arg5[%c1_14, %c0_15] : memref<2x64xf32, #tpu.memory_space<vmem>>, vector<1x64xf32>
    %39 = vector.broadcast %38 : vector<1x64xf32> to vector<8x64xf32>
    %40 = arith.addf %37, %39 : vector<8x64xf32>
    %41 = tpu.concatenate %30, %40 in 1 : vector<8x64xf32>, vector<8x64xf32> -> vector<8x128xf32>
    %c0_16 = arith.constant 0 : index
    %c0_17 = arith.constant 0 : index
    %42 = vector.load %arg6[%c0_16, %c0_17] : memref<8x128xf32, #tpu.memory_space<vmem>>, vector<8x128xf32>
    tpu.vector_store %arg6[%c0_16, %c0_17], %41 {strides = array<i32>} : memref<8x128xf32, #tpu.memory_space<vmem>>, vector<8x128xf32>,
    return
  }
  func.func @transform_0(%arg0: i32) -> (i32, i32) {
    %c0_i32 = arith.constant 0 : i32
    %c0_i32_0 = arith.constant 0 : i32
    return %arg0, %c0_i32 : i32, i32
  }
  func.func @transform_1(%arg0: i32) -> (i32, i32) {
    %c0_i32 = arith.constant 0 : i32
    %c0_i32_0 = arith.constant 0 : i32
    return %arg0, %c0_i32 : i32, i32
  }
  func.func @transform_2(%arg0: i32) -> (i32, i32) {
    %c0_i32 = arith.constant 0 : i32
    %c0_i32_0 = arith.constant 0 : i32
    %c0_i32_1 = arith.constant 0 : i32
    return %c0_i32, %c0_i32_0 : i32, i32
  }
  func.func @transform_3(%arg0: i32) -> (i32, i32) {
    %c0_i32 = arith.constant 0 : i32
    %c0_i32_0 = arith.constant 0 : i32
    %c0_i32_1 = arith.constant 0 : i32
    return %c0_i32, %c0_i32_0 : i32, i32
  }
  func.func @transform_4(%arg0: i32) -> (i32, i32) {
    %c0_i32 = arith.constant 0 : i32
    %c0_i32_0 = arith.constant 0 : i32
    %c0_i32_1 = arith.constant 0 : i32
    return %c0_i32, %c0_i32_0 : i32, i32
  }
  func.func @transform_5(%arg0: i32) -> (i32, i32) {
    %c0_i32 = arith.constant 0 : i32
    %c0_i32_0 = arith.constant 0 : i32
    return %arg0, %c0_i32 : i32, i32
  }
}

</mosaic_0001>

<bundles_post_ra>
// kernel: aa2_block.4
= control target key start
LH: loop header
LB: loop body
LE: loop exit
PB: predicated region body
PF: predicated region fallthrough
CT: control target
= control target key end

     0   :  { %s497_s15 = smov 0   ;;  %s555_s0 = inlined_call_operand.vmem [shape: f32[16,32], index: 0, kind: input, shape index: {}]   ;;  %s556_s1 = inlined_call_operand.vmem [shape: f32[16,32], index: 1, kind: input, shape index: {}]   ;;  %s557_s2 = inlined_call_operand.vmem [shape: f32[64,64], index: 2, kind: input, shape index: {}]   ;;  %s558_s3 = inlined_call_operand.vmem [shape: f32[2,64], index: 3, kind: input, shape index: {}]   ;;  %s559_s4 = inlined_call_operand.vmem [shape: f32[2,2,64], index: 4, kind: output, shape index: {}]  }
   0x1 LB: > { %s411_s16 = sadd.s32 4294967295, %s469_s15   ;;  %p415_p0 = scmp.ge.s32.totalorder %s469_s15, 1  ;;  %s469_s15 = sphi %s497_s15, %s14_s15  }
   0x2   : > { %p170_p1 = scmp.lt.s32.totalorder %s469_s15, 3 }
   0x4   : > { %p171_p2 = pnand %p415_p0, %p170_p1 }
   0x5   : > { %p198_p3 = scmp.lt.s32.totalorder (!%p171_p2), %s411_s16, 1  ;;  %s471_s10 = smov (!%p171_p2), 32  }
   0x6   : > { %174 = sbr.rel (%p171_p2) target bundleno = 355 (0x163), region = 36 }
   0xb   : > { %v219_v0 = vld [vmem:[%s557_s2 + $0x38] sm:$0xff]  ;;  %v218_v1 = vld [vmem:[%s557_s2 + $0x30] sm:$0xff]  ;;  %s561_s16 = smov (!%p198_p3, %s411_s16), 1  ;;  %v217_v2 = vld [vmem:[%s557_s2 + $0x28] sm:$0xff]  ;;  %vm225_vm0 = vcmask 261120   ;;  %vm228_vm1 = vcmask 523264  }
   0xc   : > { %435 = vmatprep.subr.mxu0 %v219_v0  ;;  %s416_s23 = sshll.u32 %s561_s16, 3  ;;  %v216_v3 = vld [vmem:[%s557_s2 + $0x20] sm:$0xff]  ;;  %v215_v6 = vld [vmem:[%s557_s2 + $0x18] sm:$0xff]  ;;  %v214_v8 = vld [vmem:[%s557_s2 + $0x10] sm:$0xff]  ;;  %s418_s21 = sshll.u32 %s561_s16, 1  ;;  %vm342_vm2 = vcmask 1040384  }
   0xd   : > { %436 = vmatpush3.msra.mxu0 %v219_v0  ;;  %s201_s28 = scalar_lea.vmem %s555_s0, %s416_s23  ;;  %s205_s5 = scalar_lea.vmem %s556_s1, %s416_s23  ;;  %v213_v9 = vld [vmem:[%s557_s2 + $0x8] sm:$0xff]  ;;  %v212_v10 = vld [vmem:[%s557_s2] sm:$0xff]  ;;  %vm344_vm3 = vcmask 517120  }
   0xe   : > { %437 = vmatprep.subr.mxu0 %v218_v1  ;;  %v210_v4 = vld [vmem:[%s201_s28] sm:$0xff]  ;;  %s209_s24 = scalar_lea.vmem %s559_s4, %s418_s21 }
   0xf   : > { %438 = vmatpush3.msra.mxu0 %v218_v1  ;;  %v211_v5 = vld [vmem:[%s205_s5] sm:$0xff] }
  0x10   : > { %439 = vmatprep.subr.mxu0 %v217_v2  ;;  %v220_v7 = vmin.f32 %v210_v4, %v211_v5  ;;  %v421_v14 = vld [vmem:[%s558_s3] ss:$0 sm:$0xff]  ;;  %v422_v16 = vld [vmem:[%s558_s3 + $0x1] ss:$0 sm:$0xff] }
  0x11   : > { %440 = vmatpush3.msra.mxu0 %v217_v2 }
  0x12   : > { %441 = vmatprep.subr.mxu0 %v216_v3  ;;  %222 = vrot.lane.b32.xlu0 %v220_v7, %s471_s10 }
  0x13   : > { %442 = vmatpush3.msra.mxu0 %v216_v3 }
  0x14   : > { %443 = vmatprep.subr.mxu0 %v215_v6 }
  0x15   : > { %444 = vmatpush3.msra.mxu0 %v215_v6 }
  0x16   : > { %445 = vmatprep.subr.mxu0 %v214_v8 }
  0x17   : > { %446 = vmatpush3.msra.mxu0 %v214_v8 }
  0x18   : > { %447 = vmatprep.subr.mxu0 %v213_v9 }
  0x19   : > { %448 = vmatpush3.msra.mxu0 %v213_v9 }
  0x1a   : > { %449 = vmatprep.subr.mxu0 %v212_v10 }
  0x1b   : > { %450 = vmatpush3.msra.mxu0 %v212_v10 }
  0x84   : > { %v223_v11 = vpop.permute.xlu0 %222 }
  0x85   : > { %v227_v12 = vsel %vm225_vm0, %v211_v5, %v223_v11  ;;  %v226_v13 = vsel %vm225_vm0, %v210_v4, %v223_v11 }
  0x86   : > { %451 = vmatprep.mubr.msk.f32.mxu0 %vm228_vm1, %v226_v13 }
  0x87   : > { %452 = vmatmul.mubr.msk.f32.vlgmr.msra.gmra.mxu0 %vm228_vm1, %v227_v12 }
 0x147   : > { %v453_v15 = vpop.f32.mrf.mxu0 }
 0x148   : > { %v323_v17 = vmul.f32 %v453_v15, %v421_v14 }
 0x149   : > { %v301_v18 = vpop.f32.mrf.mxu0 }
 0x14a   : > { %v324_v19 = vadd.f32 %v422_v16, %v323_v17  ;;  %v316_v20 = vmul.f32 %v421_v14, %v301_v18 }
 0x14c   : > { %v321_v21 = vadd.f32 %v422_v16, %v316_v20  ;;  %v325_v22 = vmax.f32 %v324_v19, 0.0 }
 0x14e   : > { %v322_v23 = vmax.f32 %v321_v21, 0.0 }
 0x150   : > { %v326_v24 = vmax.f32 %v322_v23, %v325_v22 }
 0x152   : > { %v327_v25 = vsel %vm228_vm1, %v326_v24, 0.0  ;;  %v334_v26 = vmul.f32 %v326_v24, %v326_v24 }
 0x153   : > { %v328_v27 = vrot.slane %v327_v25, 4 }
 0x154   : > { %v335_v28 = vsel %vm228_vm1, %v334_v26, 0.0 }
 0x155   : > { %v329_v29 = vadd.f32 %v328_v27, %v327_v25  ;;  %v336_v30 = vrot.slane %v335_v28, 4 }
 0x157   : > { %v330_v31 = vrot.slane %v329_v29, 2  ;;  %v337_v32 = vadd.f32 %v336_v30, %v335_v28 }
 0x159   : > { %v331_v33 = vadd.f32 %v330_v31, %v329_v29  ;;  %v338_v34 = vrot.slane %v337_v32, 2 }
 0x15b   : > { %v332_v35 = vrot.slane %v331_v33, 1  ;;  %v339_v36 = vadd.f32 %v338_v34, %v337_v32 }
 0x15d   : > { %v340_v37 = vrot.slane %v339_v36, 1  ;;  %v333_v38 = vadd.f32 %v332_v35, %v331_v33 }
 0x15f   : > { %v341_v39 = vadd.f32 %v340_v37, %v339_v36 }
 0x161   : > { %v343_v40 = vsel %vm342_vm2, %v333_v38, %v341_v39 }
 0x162   : > { %345 = vst.msk [vmem:[%s209_s24] sm:$0x3] %vm344_vm3, %v343_v40 }
 0x163 PF: > { %s14_s15 = sadd.s32 1, %s469_s15  }
 0x164   : > { %p11_p4 = scmp.ge.s32.totalorder %s14_s15, 4  }
 0x166   :  { %13 = sbr.rel (!%p11_p4) target bundleno = 1 (0x1), region = 69 }

// kernel: aa2_block.5
= control target key start
LH: loop header
LB: loop body
LE: loop exit
PB: predicated region body
PF: predicated region fallthrough
CT: control target
= control target key end

     0   :  { %10 = vsyncpa [#allocation3], 0  ;;  %s802_s0 = inlined_call_operand.vmem [shape: f32[16,32], index: 0, kind: input, shape index: {}]   ;;  %s803_s1 = inlined_call_operand.vmem [shape: f32[16,32], index: 1, kind: input, shape index: {}]   ;;  %s804_s2 = inlined_call_operand.vmem [shape: f32[64,64], index: 2, kind: input, shape index: {}]   ;;  %s805_s3 = inlined_call_operand.vmem [shape: f32[4,64], index: 3, kind: input, shape index: {}]   ;;  %s806_s4 = inlined_call_operand.vmem [shape: f32[2,64], index: 4, kind: input, shape index: {}]   ;;  %s807_s5 = inlined_call_operand.hbm [shape: f32[16,128], index: 5, kind: output, shape index: {}]  }
   0x1   :  { %12 = vsyncpa [#allocation3 + $0x1], 0  ;;  %s661_s18 = smov 0   ;;  %s663_s19 = smov 0  }
   0x2   :  { %s665_s20 = smov 0   ;;  %s667_s21 = smov 0  }
   0x3 LB: > { %s682_s22 = sadd.s32 4294967295, %s626_s21   ;;  %s477_s23 = sadd.s32 4294967294, %s626_s21   ;;  %s626_s21 = sphi %s667_s21, %s813_s21   ;;  %s622_s20 = sphi %s665_s20, %s812_s20   ;;  %s618_s19 = sphi %s663_s19, %s811_s19   ;;  %s614_s18 = sphi %s661_s18, %s810_s18  }
   0x4   : > { %s686_s24 = sadd.s32 1, %s626_s21   ;;  %s140_s25 = sadd.s32 1, %s622_s20 }
   0x5   : > { %s137_s26 = ssub.s32 %s626_s21, %s686_s24  ;;  %p150_p0 = scmp.ne.s32.totalorder %s622_s20, %s618_s19 }
   0x6   : > { %p138_p1 = scmp.eq.s32.totalorder %s137_s26, 0  ;;  %p151_p2 = scmp.eq.s32.totalorder %s682_s22, 1 }
   0x7   : > { %p156_p3 = scmp.ne.s32.totalorder %s618_s19, %s614_s18  ;;  %p157_p4 = scmp.eq.s32.totalorder %s477_s23, 1 }
   0x8   : > { %s697_s27 = scalar_select %p138_p1, %s622_s20, %s140_s25  }
   0x9   : > { %p699_p5 = por %p151_p2, %p150_p0  ;;  %p703_p6 = por %p157_p4, %p156_p3 }
   0xa   : > { %p480_p7 = scmp.ge.s32.totalorder %s626_s21, 1  ;;  %p198_p8 = scmp.lt.s32.totalorder %s626_s21, 3 }
   0xc   : > { %p199_p9 = pnand %p480_p7, %p198_p8 }
   0xd   : > { %p229_p10 = scmp.lt.s32.totalorder (!%p199_p9), %s682_s22, 1  ;;  %s629_s23 = smov (!%p199_p9), 64  }
   0xe   : > { %202 = sbr.rel (%p199_p9) target bundleno = 365 (0x16d), region = 40  ;;  %s226_s7 = sand.u32 (!%p199_p9), 1, %s618_s19  }
   0xf   : > { %s481_s8 = sshll.u32 (!%p199_p9), %s226_s7, 3  ;;  %s493_s13 = sshll.u32 (!%p199_p9), %s682_s22, 7 }
  0x10   : > { %s228_s14 = scalar_lea.vmem (!%p199_p9), [#allocation2], %s481_s8  ;;  %s393_s25 = scalar_lea.sflag (!%p199_p9), [#allocation3], %s226_s7 }
  0x11   : > { %s406_s15 = sshll.u32 (!%p199_p9), %s228_s14, 4  ;;  %s407_s15 = int_to_ptr.vmem [resolvable:$true] %s406_s15 }
  0x13   : > { %v246_v0 = vld [vmem:[%s804_s2 + $0x38] sm:$0xff]  ;;  %v245_v1 = vld [vmem:[%s804_s2 + $0x30] sm:$0xff]  ;;  %s230_s9 = scalar_select %p229_p10, %s682_s22, 1  ;;  %v244_v2 = vld [vmem:[%s804_s2 + $0x28] sm:$0xff]  ;;  %vm252_vm0 = vcmask 261120   ;;  %vm255_vm1 = vcmask 523264  }
  0x14   : > { %506 = vmatprep.subr.mxu0 %v246_v0  ;;  %v243_v3 = vld [vmem:[%s804_s2 + $0x20] sm:$0xff]  ;;  %v242_v6 = vld [vmem:[%s804_s2 + $0x18] sm:$0xff]  ;;  %v241_v8 = vld [vmem:[%s804_s2 + $0x10] sm:$0xff]  ;;  %s630_s22 = smov [#allocation2]  }
  0x15   : > { %507 = vmatpush3.msra.mxu0 %v246_v0  ;;  %s482_s12 = sshll.u32 %s230_s9, 3  ;;  %s628_s9 = smov 32   ;;  %v240_v10 = vld [vmem:[%s804_s2 + $0x8] sm:$0xff]  ;;  %v239_v11 = vld [vmem:[%s804_s2] sm:$0xff] }
  0x16   : > { %508 = vmatprep.subr.mxu0 %v245_v1  ;;  %s232_s17 = scalar_lea.vmem %s802_s0, %s482_s12  ;;  %s236_s26 = scalar_lea.vmem %s803_s1, %s482_s12  ;;  %v490_v17 = vld [vmem:[%s806_s4] ss:$0 sm:$0xff]  ;;  %v491_v20 = vld [vmem:[%s806_s4 + $0x1] ss:$0 sm:$0xff]  ;;  %v488_v33 = vld [vmem:[%s805_s3 + $0x2] ss:$0 sm:$0xff] }
  0x17   : > { %509 = vmatpush3.msra.mxu0 %v245_v1  ;;  %v237_v4 = vld [vmem:[%s232_s17] sm:$0xff]  ;;  %s570_s30 = sshll.u32 %s630_s22, 4  ;;  %s571_s30 = int_to_ptr.vmem [resolvable:$false] %s570_s30 }
  0x18   : > { %510 = vmatprep.subr.mxu0 %v244_v2  ;;  %v238_v5 = vld [vmem:[%s236_s26] sm:$0xff]  ;;  %s566_s26 = scalar_lea.vmem %s407_s15, 128  ;;  %s572_s6 = scalar_lea.vmem %s571_s30, 256 }
  0x19   : > { %511 = vmatpush3.msra.mxu0 %v244_v2  ;;  %v247_v7 = vmin.f32 %v237_v4, %v238_v5  ;;  %v368_v9 = vmax.f32 %v237_v4, %v238_v5  ;;  %v366_v12 = vsub.f32 %v237_v4, %v238_v5  ;;  %v486_v23 = vld [vmem:[%s805_s3] ss:$0 sm:$0xff]  ;;  %v487_v25 = vld [vmem:[%s805_s3 + $0x1] ss:$0 sm:$0xff]  ;;  %v489_v35 = vld [vmem:[%s805_s3 + $0x3] ss:$0 sm:$0xff]  ;;  %p567_p11 = scmp.ne.s32.totalorder %s407_s15, %s566_s26  ;;  %p573_p0 = scmp.lt.s32.totalorder %s407_s15, %s571_s30 }
  0x1a   : > { %512 = vmatprep.subr.mxu0 %v243_v3  ;;  %p574_p1 = scmp.lt.s32.totalorder %s572_s6, %s566_s26 }
  0x1b   : > { %513 = vmatpush3.msra.mxu0 %v243_v3  ;;  %249 = vrot.lane.b32.xlu0 %v247_v7, %s628_s9  ;;  %v367_v16 = vmul.f32 %v366_v12, %v366_v12  ;;  %p568_p12 = pnand %p567_p11, %p699_p5 }
  0x1c   : > { %514 = vmatprep.subr.mxu0 %v242_v6  ;;  %p575_p2 = por %p574_p1, %p573_p0 }
  0x1d   : > { %515 = vmatpush3.msra.mxu0 %v242_v6  ;;  %p569_p13 = pneg %p568_p12 }
  0x1e   : > { %516 = vmatprep.subr.mxu0 %v241_v8 }
  0x1f   : > { %517 = vmatpush3.msra.mxu0 %v241_v8  ;;  %370 = vrot.lane.b32.xlu0 %v368_v9, %s628_s9  ;;  %p576_p3 = pnand %p575_p2, %p569_p13 }
  0x20   : > { %518 = vmatprep.subr.mxu0 %v240_v10 }
  0x21   : > { %519 = vmatpush3.msra.mxu0 %v240_v10 }
  0x22   : > { %520 = vmatprep.subr.mxu0 %v239_v11 }
  0x23   : > { %521 = vmatpush3.msra.mxu0 %v239_v11 }
  0x8d   : > { %v250_v13 = vpop.permute.xlu0 %249 }
  0x8e   : > { %v254_v14 = vsel %vm252_vm0, %v238_v5, %v250_v13  ;;  %v253_v15 = vsel %vm252_vm0, %v237_v4, %v250_v13 }
  0x8f   : > { %522 = vmatprep.mubr.msk.f32.mxu0 %vm255_vm1, %v253_v15 }
  0x90   : > { %523 = vmatmul.mubr.msk.f32.vlgmr.msra.gmra.mxu0 %vm255_vm1, %v254_v14 }
  0x91   : > { %v371_v18 = vpop.permute.xlu0 %370 }
  0x92   : > { %v373_v19 = vsel %vm252_vm0, %v367_v16, %v371_v18 }
  0x93   : > { %v379_v21 = vmul.f32 %v490_v17, %v373_v19 }
  0x95   : > { %v385_v22 = vadd.f32 %v491_v20, %v379_v21 }
  0x97   : > { %387 = vrot.lane.b32.xlu1 %v385_v22, %s629_s23  ;;  %s766_s23 = scalar_lea.hbm %s807_s5, %s493_s13 }
 0x109   : > { %v388_v37 = vpop.permute.xlu1 %387 }
 0x150   : > { %v524_v24 = vpop.f32.mrf.mxu0 }
 0x151   : > { %v352_v26 = vmul.f32 %v524_v24, %v486_v23 }
 0x152   : > { %v328_v27 = vpop.f32.mrf.mxu0 }
 0x153   : > { %v353_v28 = vadd.f32 %v487_v25, %v352_v26  ;;  %v345_v29 = vmul.f32 %v486_v23, %v328_v27 }
 0x155   : > { %v350_v30 = vadd.f32 %v487_v25, %v345_v29  ;;  %v354_v31 = vmax.f32 %v353_v28, 0.0 }
 0x157   : > { %v351_v32 = vmax.f32 %v350_v30, 0.0 }
 0x159   : > { %v355_v34 = vmax.f32 %v351_v32, %v354_v31 }
 0x15b   : > { %v360_v36 = vmul.f32 %v488_v33, %v355_v34 }
 0x15d   : > { %v365_v38 = vadd.f32 %v489_v35, %v360_v36 }
 0x15f   : > { %v390_v39 = vsel %vm255_vm1, %v365_v38, %v388_v37 }
 0x160   : > { %391 = vst [vmem:[%s228_s14] sm:$0xff] %v390_v39 }
 0x161   : > { %579 = shalt.err (!%p576_p3)
}
 0x162   : > { %s580_s8 = scalar_lea.hbm %s766_s23, 128  ;;  %s584_s10 = scalar_lea.hbm %s807_s5, 256 }
 0x163   : > { %p581_p4 = scmp.ne.s32.totalorder %s766_s23, %s580_s8  ;;  %p585_p9 = scmp.lt.s32.totalorder %s766_s23, %s807_s5 }
 0x164   : > { %p586_p10 = scmp.lt.s32.totalorder %s584_s10, %s580_s8 }
 0x165   : > { %p582_p7 = pnand %p581_p4, %p699_p5 }
 0x166   : > { %p587_p11 = por %p586_p10, %p585_p9 }
 0x167   : > { %p583_p8 = pneg %p582_p7 }
 0x169   : > { %p588_p12 = pnand %p587_p11, %p583_p8 }
 0x16b   : > { %591 = shalt.err (!%p588_p12)
}
 0x16c   : > { %525 = dma.vmem_to_hbm [thread:$0]  (%p699_p5), %s407_s15, 128, %s766_s23, %s393_s25  }
 0x16d PF: > { %p531_p13 = scmp.ge.s32.totalorder %s626_s21, 2  ;;  %s418_s13 = sand.u32 1, %s614_s18  }
 0x16e   : > { %s419_s14 = scalar_lea.sflag [#allocation3], %s418_s13 }
 0x16f   : > { %p528_p0 = pnand %p531_p13, %p703_p6 }
 0x171   : > { %p529_p1 = pneg %p528_p0 }
 0x173   : > { %609 = dma.done.wait (%p529_p1), %s419_s14, 128  }
 0x174   : > { %611 = vsyncadd (%p529_p1), %s419_s14, 4294967168  ;;  %p15_p2 = scmp.ge.s32.totalorder %s686_s24, 4   ;;  %s810_s18 = smov %s618_s19 }
 0x175   : > { %s811_s19 = smov %s622_s20  ;;  %s812_s20 = smov %s697_s27 }
 0x176   : > { %s813_s21 = smov %s686_s24  ;;  %17 = sbr.rel (!%p15_p2) target bundleno = 3 (0x3), region = 78 }
 0x17b   :  { %424 = vsyncpa [#allocation3], 1 }
 0x17c   :  { %426 = vsyncpa [#allocation3 + $0x1], 1 }

// kernel: aa2_block.3
= control target key start
LH: loop header
LB: loop body
LE: loop exit
PB: predicated region body
PF: predicated region fallthrough
CT: control target
= control target key end

     0   :  { %10 = vsyncpa [#allocation3], 0  ;;  %s1012_s0 = inlined_call_operand.hbm [shape: f32[16,32], index: 0, kind: input, shape index: {}]   ;;  %s1013_s1 = inlined_call_operand.hbm [shape: f32[16,32], index: 1, kind: input, shape index: {}]   ;;  %s1014_s2 = inlined_call_operand.hbm [shape: f32[64,64], index: 2, kind: input, shape index: {}]   ;;  %s1015_s3 = inlined_call_operand.vmem [shape: f32[2,2,64], index: 3, kind: output, shape index: {0}]   ;;  %s1016_s4 = inlined_call_operand.vmem [shape: f32[2,2,64], index: 4, kind: output, shape index: {1}]  }
   0x1   :  { %12 = vsyncpa [#allocation3 + $0x1], 0 }
   0x2   :  { %13 = vsyncpa [#allocation5], 0 }
   0x3   :  { %15 = vsyncpa [#allocation5 + $0x1], 0  ;;  %s826_s15 = smov 0   ;;  %s828_s16 = smov 0  }
   0x4   :  { %s830_s17 = smov 0   ;;  %s832_s18 = smov 0  }
   0x5 LB: > { %s845_s19 = sadd.s32 4294967295, %s793_s18   ;;  %p41_p0 = scmp.ne.s32.totalorder %s785_s16, %s781_s15  ;;  %s793_s18 = sphi %s832_s18, %s1031_s18   ;;  %s789_s17 = sphi %s830_s17, %s1030_s17   ;;  %s785_s16 = sphi %s828_s16, %s1029_s16   ;;  %s781_s15 = sphi %s826_s15, %s1028_s15  }
   0x6   : > { %p1017_p1 = scmp.eq.s32.totalorder %s845_s19, 0  ;;  %p565_p2 = scmp.ge.s32.totalorder %s793_s18, 1 }
   0x7   : > { %p151_p3 = scmp.lt.s32.totalorder %s793_s18, 3  ;;  %s795_s22 = smov [#allocation6]  }
   0x8   : > { %p853_p4 = por %p1017_p1, %p41_p0  ;;  %s163_s23 = sshll.u32 %s795_s22, 4  ;;  %s164_s23 = int_to_ptr.vmem [resolvable:$true] %s163_s23 }
   0x9   : > { %p857_p5 = pnand %p565_p2, %p151_p3  ;;  %s870_s25 = sadd.s32 1, %s793_s18  }
   0xa   : > { %s1020_s20 = scalar_select %p853_p4, 1, 0 }
   0xb   : > { %s1021_s21 = scalar_select %p857_p5, 1, 0 }
   0xc   : > { %p619_p6 = pneg %p857_p5  ;;  %s28_s26 = sadd.s32 1, %s789_s17 }
   0xd   : > { %s25_s27 = ssub.s32 %s793_s18, %s870_s25  ;;  %s680_s28 = scalar_lea.vmem %s164_s23, 1024 }
   0xe   : > { %p865_p7 = pnand %p619_p6, %p1017_p1  ;;  %p681_p9 = scmp.ne.s32.totalorder %s164_s23, %s680_s28 }
   0xf   : > { %p688_p12 = scmp.lt.s32.totalorder %s164_s23, %s164_s23  ;;  %p689_p13 = scmp.lt.s32.totalorder %s680_s28, %s680_s28 }
  0x10   : > { %p671_p8 = pneg %p865_p7 }
  0x11   : > { %p690_p0 = por %p689_p13, %p688_p12 }
  0x12   : > { %p683_p10 = pnand %p681_p9, %p671_p8 }
  0x14   : > { %p684_p11 = pneg %p683_p10 }
  0x16   : > { %p691_p2 = pnand %p690_p0, %p684_p11 }
  0x18   : > { %694 = shalt.err (!%p691_p2)
}
  0x19   : > { %s796_s29 = smov 128   ;;  %s797_s30 = smov 8  }
  0x1a   : > { %622 = dma.hbm_to_vmem [thread:$0]  (!%p865_p7), %s1014_s2, 1024, %s164_s23, [#allocation5], %s796_s29, %s796_s29, %s797_s30  }
  0x1b   : > { %p26_p3 = scmp.eq.s32.totalorder %s25_s27, 0  ;;  %p35_p6 = scmp.ne.s32.totalorder %s789_s17, %s785_s16 }
  0x1c   : > { %p36_p8 = scmp.eq.s32.totalorder %s793_s18, 0  ;;  %p631_p9 = scmp.lt.s32.totalorder %s793_s18, 2 }
  0x1d   : > { %s887_s7 = scalar_select %p26_p3, %s789_s17, %s28_s26  }
  0x1e   : > { %p37_p10 = por %p36_p8, %p35_p6  ;;  %s177_s8 = sand.u32 1, %s789_s17  }
  0x1f   : > { %s890_s9 = sshll.u32 %s177_s8, 3  ;;  %s569_s10 = sshll.u32 %s793_s18, 7 }
  0x20   : > { %s896_s13 = scalar_lea.hbm %s1012_s0, %s569_s10  ;;  %s181_s14 = scalar_lea.vmem [#allocation2], %s890_s9 }
  0x21   : > { %s188_s15 = sshll.u32 %s181_s14, 4  ;;  %p901_p7 = pnand %p631_p9, %p37_p10  ;;  %s899_s15 = int_to_ptr.vmem [resolvable:$true] %s188_s15 }
  0x22   : > { %s908_s26 = scalar_lea.hbm %s1013_s1, %s569_s10  ;;  %s195_s27 = sand.u32 1, %s793_s18  }
  0x23   : > { %s178_s28 = scalar_lea.sflag [#allocation3], %s177_s8  ;;  %s695_s29 = scalar_lea.hbm %s896_s13, 128 }
  0x24   : > { %p696_p11 = scmp.ne.s32.totalorder %s896_s13, %s695_s29  ;;  %p697_p12 = pneg %p901_p7 }
  0x25   : > { %s700_s6 = scalar_lea.hbm %s1012_s0, 256  ;;  %p701_p2 = scmp.lt.s32.totalorder %s896_s13, %s1012_s0 }
  0x26   : > { %p698_p13 = pnand %p697_p12, %p696_p11  ;;  %p702_p3 = scmp.lt.s32.totalorder %s700_s6, %s695_s29 }
  0x28   : > { %p699_p0 = pneg %p698_p13  ;;  %p703_p6 = por %p702_p3, %p701_p2 }
  0x2a   : > { %p704_p8 = pnand %p703_p6, %p699_p0 }
  0x2c   : > { %707 = shalt.err (!%p704_p8)
}
  0x2d   : > { %s708_s8 = scalar_lea.vmem %s899_s15, 128  ;;  %s798_s10 = smov [#allocation2]  }
  0x2e   : > { %p709_p9 = scmp.ne.s32.totalorder %s899_s15, %s708_s8  ;;  %s713_s14 = sshll.u32 %s798_s10, 4  ;;  %s714_s14 = int_to_ptr.vmem [resolvable:$false] %s713_s14 }
  0x2f   : > { %s715_s23 = scalar_lea.vmem %s714_s14, 256  ;;  %p716_p13 = scmp.lt.s32.totalorder %s899_s15, %s714_s14 }
  0x30   : > { %p711_p10 = pnand %p709_p9, %p697_p12  ;;  %p717_p1 = scmp.lt.s32.totalorder %s715_s23, %s708_s8 }
  0x32   : > { %p712_p11 = pneg %p711_p10  ;;  %p718_p4 = por %p717_p1, %p716_p13 }
  0x34   : > { %p719_p2 = pnand %p718_p4, %p712_p11 }
  0x36   : > { %722 = shalt.err (!%p719_p2)
}
  0x37   : > { %626 = dma.hbm_to_vmem [thread:$0]  (!%p901_p7), %s896_s13, 128, %s899_s15, %s178_s28  }
  0x38   : > { %s199_s24 = scalar_lea.vmem [#allocation4], %s890_s9  ;;  %s196_s30 = scalar_lea.sflag [#allocation5], %s195_s27 }
  0x39   : > { %s206_s29 = sshll.u32 %s199_s24, 4  ;;  %s723_s5 = scalar_lea.hbm %s908_s26, 128  ;;  %s207_s29 = int_to_ptr.vmem [resolvable:$true] %s206_s29 }
  0x3a   : > { %p724_p1 = scmp.ne.s32.totalorder %s908_s26, %s723_s5  ;;  %s728_s12 = scalar_lea.hbm %s1013_s1, 256 }
  0x3b   : > { %p729_p3 = scmp.lt.s32.totalorder %s908_s26, %s1013_s1  ;;  %p730_p6 = scmp.lt.s32.totalorder %s728_s12, %s723_s5 }
  0x3c   : > { %p726_p4 = pnand %p724_p1, %p697_p12 }
  0x3d   : > { %p731_p8 = por %p730_p6, %p729_p3 }
  0x3e   : > { %p727_p0 = pneg %p726_p4 }
  0x40   : > { %p732_p9 = pnand %p731_p8, %p727_p0 }
  0x42   : > { %735 = shalt.err (!%p732_p9)
}
  0x43   : > { %s736_s18 = scalar_lea.vmem %s207_s29, 128  ;;  %s799_s9 = smov [#allocation4]  }
  0x44   : > { %p737_p10 = scmp.ne.s32.totalorder %s207_s29, %s736_s18  ;;  %s741_s13 = sshll.u32 %s799_s9, 4  ;;  %s742_s13 = int_to_ptr.vmem [resolvable:$false] %s741_s13 }
  0x45   : > { %s743_s15 = scalar_lea.vmem %s742_s13, 256  ;;  %p744_p2 = scmp.lt.s32.totalorder %s207_s29, %s742_s13 }
  0x46   : > { %p739_p11 = pnand %p737_p10, %p697_p12  ;;  %p745_p1 = scmp.lt.s32.totalorder %s743_s15, %s736_s18 }
  0x48   : > { %p740_p13 = pneg %p739_p11  ;;  %p746_p4 = por %p745_p1, %p744_p2 }
  0x4a   : > { %p747_p5 = pnand %p746_p4, %p740_p13 }
  0x4c   : > { %750 = shalt.err (!%p747_p5)
}
  0x4d   : > { %629 = dma.hbm_to_vmem [thread:$0]  (!%p901_p7), %s908_s26, 128, %s207_s29, %s196_s30  }
  0x4e   : > { %p1024_p0 = scmp.ne.s32.totalorder %s1021_s21, 0 }
  0x4f   : > { %s217_s27 = sand.u32 (!%p1024_p0), 1, %s785_s16   ;;  %p1025_p12 = scmp.ne.s32.totalorder (!%p1024_p0), %s1020_s20, 0 }
  0x50   : > { %215 = sbr.rel (%p1024_p0) target bundleno = 426 (0x1aa), region = 32  ;;  %s573_s28 = sshll.u32 (!%p1024_p0), %s217_s27, 3 }
  0x51   : > { %s218_s14 = scalar_lea.sflag (!%p1024_p0), [#allocation3], %s217_s27  ;;  %s221_s23 = scalar_lea.vmem (!%p1024_p0), [#allocation2], %s573_s28 }
  0x55   : > { %768 = dma.done.wait (%p1025_p12), %s218_s14, 128  }
  0x56   : > { %770 = vsyncadd (%p1025_p12), %s218_s14, 4294967168  ;;  %s226_s24 = sand.u32 1, %s845_s19   ;;  %s230_s5 = scalar_lea.vmem [#allocation4], %s573_s28 }
  0x57   : > { %s227_s22 = scalar_lea.sflag [#allocation5], %s226_s24 }
  0x58   : > { %772 = dma.done.wait (%p1025_p12), %s227_s22, 128  }
  0x59   : > { %774 = vsyncadd (%p1025_p12), %s227_s22, 4294967168  ;;  %p1026_p5 = scmp.eq.s32.totalorder %s845_s19, 0 }
  0x5b   : > { %776 = dma.done.wait (%p1026_p5), [#allocation5], 1024   ;;  %p1027_p7 = pmov %p1026_p5 }
  0x5c   : > { %v275_v0 = vld [vmem:[%s221_s23] sm:$0xff]  ;;  %v276_v1 = vld [vmem:[%s230_s5] sm:$0xff]  ;;  %s800_s21 = smov 32   ;;  %vm290_vm0 = vcmask 261120   ;;  %vm293_vm1 = vcmask 523264   ;;  %p267_p3 = scmp.lt.s32.totalorder %s845_s19, 1 }
  0x5d   : > { %778 = vsyncadd (%p1027_p7), [#allocation5], 4294966272  ;;  %v284_v2 = vld [vmem:[#allocation6 + $0x38] sm:$0xff]  ;;  %v285_v3 = vmin.f32 %v275_v0, %v276_v1  ;;  %v283_v4 = vld [vmem:[#allocation6 + $0x30] sm:$0xff]  ;;  %v413_v6 = vmax.f32 %v275_v0, %v276_v1  ;;  %v411_v12 = vsub.f32 %v275_v0, %v276_v1  ;;  %vm407_vm2 = vcmask 1040384  }
  0x5e   : > { %592 = vmatprep.subr.mxu0 %v284_v2  ;;  %v282_v5 = vld [vmem:[#allocation6 + $0x28] sm:$0xff]  ;;  %v281_v7 = vld [vmem:[#allocation6 + $0x20] sm:$0xff]  ;;  %v280_v8 = vld [vmem:[#allocation6 + $0x18] sm:$0xff]  ;;  %s1033_s19 = smov (!%p267_p3, %s845_s19), 1  ;;  %vm409_vm3 = vcmask 517120  }
  0x5f   : > { %593 = vmatpush3.msra.mxu0 %v284_v2  ;;  %287 = vrot.lane.b32.xlu0 %v285_v3, %s800_s21  ;;  %v279_v9 = vld [vmem:[#allocation6 + $0x10] sm:$0xff]  ;;  %v278_v10 = vld [vmem:[#allocation6 + $0x8] sm:$0xff]  ;;  %v277_v11 = vld [vmem:[#allocation6] sm:$0xff]  ;;  %v412_v16 = vmul.f32 %v411_v12, %v411_v12  ;;  %s576_s20 = sshll.u32 %s1033_s19, 1 }
  0x60   : > { %594 = vmatprep.subr.mxu0 %v283_v4  ;;  %s274_s30 = scalar_lea.vmem %s1016_s4, %s576_s20  ;;  %s270_s12 = scalar_lea.vmem %s1015_s3, %s576_s20 }
  0x61   : > { %595 = vmatpush3.msra.mxu0 %v283_v4 }
  0x62   : > { %596 = vmatprep.subr.mxu0 %v282_v5 }
  0x63   : > { %597 = vmatpush3.msra.mxu0 %v282_v5  ;;  %415 = vrot.lane.b32.xlu0 %v413_v6, %s800_s21 }
  0x64   : > { %598 = vmatprep.subr.mxu0 %v281_v7 }
  0x65   : > { %599 = vmatpush3.msra.mxu0 %v281_v7 }
  0x66   : > { %600 = vmatprep.subr.mxu0 %v280_v8 }
  0x67   : > { %601 = vmatpush3.msra.mxu0 %v280_v8 }
  0x68   : > { %602 = vmatprep.subr.mxu0 %v279_v9 }
  0x69   : > { %603 = vmatpush3.msra.mxu0 %v279_v9 }
  0x6a   : > { %604 = vmatprep.subr.mxu0 %v278_v10 }
  0x6b   : > { %605 = vmatpush3.msra.mxu0 %v278_v10 }
  0x6c   : > { %606 = vmatprep.subr.mxu0 %v277_v11 }
  0x6d   : > { %607 = vmatpush3.msra.mxu0 %v277_v11 }
  0xd1   : > { %v288_v13 = vpop.permute.xlu0 %287 }
  0xd2   : > { %v292_v14 = vsel %vm290_vm0, %v276_v1, %v288_v13  ;;  %v291_v15 = vsel %vm290_vm0, %v275_v0, %v288_v13 }
  0xd3   : > { %608 = vmatprep.mubr.msk.f32.mxu0 %vm293_vm1, %v291_v15 }
  0xd4   : > { %609 = vmatmul.mubr.msk.f32.vlgmr.msra.gmra.mxu0 %vm293_vm1, %v292_v14 }
  0xd5   : > { %v416_v17 = vpop.permute.xlu0 %415 }
  0xd6   : > { %v418_v18 = vsel %vm290_vm0, %v412_v16, %v416_v17 }
  0xd7   : > { %v419_v19 = vsel %vm293_vm1, %v418_v18, 0.0  ;;  %v426_v20 = vmul.f32 %v418_v18, %v418_v18 }
  0xd8   : > { %v420_v21 = vrot.slane %v419_v19, 4 }
  0xd9   : > { %v427_v22 = vsel %vm293_vm1, %v426_v20, 0.0 }
  0xda   : > { %v421_v23 = vadd.f32 %v420_v21, %v419_v19  ;;  %v428_v24 = vrot.slane %v427_v22, 4 }
  0xdc   : > { %v422_v25 = vrot.slane %v421_v23, 2  ;;  %v429_v26 = vadd.f32 %v428_v24, %v427_v22 }
  0xde   : > { %v423_v27 = vadd.f32 %v422_v25, %v421_v23  ;;  %v430_v28 = vrot.slane %v429_v26, 2 }
  0xe0   : > { %v424_v29 = vrot.slane %v423_v27, 1  ;;  %v431_v30 = vadd.f32 %v430_v28, %v429_v26 }
  0xe2   : > { %v425_v31 = vadd.f32 %v424_v29, %v423_v27  ;;  %v432_v32 = vrot.slane %v431_v30, 1 }
  0xe4   : > { %v433_v33 = vadd.f32 %v432_v32, %v431_v30 }
  0xe6   : > { %v434_v34 = vsel %vm407_vm2, %v425_v31, %v433_v33 }
  0xe7   : > { %435 = vst.msk [vmem:[%s274_s30] sm:$0x3] %vm409_vm3, %v434_v34 }
 0x194   : > { %v610_v35 = vpop.f32.mrf.mxu0 }
 0x195   : > { %v382_v36 = vsel %vm293_vm1, %v610_v35, 0.0  ;;  %v398_v37 = vmul.f32 %v610_v35, %v610_v35 }
 0x196   : > { %v383_v38 = vrot.slane %v382_v36, 4  ;;  %v366_v39 = vpop.f32.mrf.mxu0 }
 0x197   : > { %v399_v40 = vsel %vm293_vm1, %v398_v37, 0.0  ;;  %v375_v41 = vsel %vm293_vm1, %v366_v39, 0.0  ;;  %v390_v42 = vmul.f32 %v366_v39, %v366_v39 }
 0x198   : > { %v384_v43 = vadd.f32 %v383_v38, %v382_v36  ;;  %v400_v44 = vrot.slane %v399_v40, 4  ;;  %v376_v45 = vrot.slane %v375_v41, 4 }
 0x199   : > { %v391_v46 = vsel %vm293_vm1, %v390_v42, 0.0 }
 0x19a   : > { %v385_v47 = vrot.slane %v384_v43, 2  ;;  %v401_v48 = vadd.f32 %v400_v44, %v399_v40  ;;  %v377_v49 = vadd.f32 %v376_v45, %v375_v41  ;;  %v392_v50 = vrot.slane %v391_v46, 4 }
 0x19c   : > { %v386_v51 = vadd.f32 %v385_v47, %v384_v43  ;;  %v402_v52 = vrot.slane %v401_v48, 2  ;;  %v378_v53 = vrot.slane %v377_v49, 2  ;;  %v393_v54 = vadd.f32 %v392_v50, %v391_v46 }
 0x19e   : > { %v403_v55 = vadd.f32 %v402_v52, %v401_v48  ;;  %v379_v56 = vadd.f32 %v378_v53, %v377_v49  ;;  %v394_v57 = vrot.slane %v393_v54, 2  ;;  %v387_v58 = vrot.slane %v386_v51, 1 }
 0x1a0   : > { %v404_v59 = vrot.slane %v403_v55, 1  ;;  %v380_v60 = vrot.slane %v379_v56, 1  ;;  %v395_v61 = vadd.f32 %v394_v57, %v393_v54  ;;  %v388_v0 = vadd.f32 %v387_v58, %v386_v51 }
 0x1a2   : > { %v381_v62 = vadd.f32 %v380_v60, %v379_v56  ;;  %v396_v63 = vrot.slane %v395_v61, 1  ;;  %v405_v1 = vadd.f32 %v404_v59, %v403_v55 }
 0x1a4   : > { %v397_v2 = vadd.f32 %v396_v63, %v395_v61  ;;  %v389_v3 = vadd.f32 %v388_v0, %v381_v62 }
 0x1a6   : > { %v406_v4 = vadd.f32 %v405_v1, %v397_v2 }
 0x1a8   : > { %v408_v5 = vsel %vm407_vm2, %v389_v3, %v406_v4 }
 0x1a9   : > { %410 = vst.msk [vmem:[%s270_s12] sm:$0x3] %vm409_vm3, %v408_v5 }
 0x1aa PF: > { %p18_p6 = scmp.ge.s32.totalorder %s870_s25, 4   ;;  %s1028_s15 = smov %s785_s16 }
 0x1ab   : > { %s1029_s16 = smov %s789_s17  ;;  %s1030_s17 = smov %s887_s7 }
 0x1ac   : > { %s1031_s18 = smov %s870_s25  ;;  %20 = sbr.rel (!%p18_p6) target bundleno = 5 (0x5), region = 101 }
 0x1b1   :  { %469 = vsyncpa [#allocation3], 1 }
 0x1b2   :  { %471 = vsyncpa [#allocation3 + $0x1], 1 }
 0x1b3   :  { %472 = vsyncpa [#allocation5], 1 }
 0x1b4   :  { %474 = vsyncpa [#allocation5 + $0x1], 1 }

</bundles_post_ra>
